<compile_context>
chip_gen: v6e
topology: v6e:2x2x1
jax: 0.10.0
libtpu: 0.0.40
codegen_flags: <defaults>
</compile_context>

<pallas_src>
import math
from functools import lru_cache

import jax
import jax.numpy as jnp
from jax.experimental import pallas as pl
from jax.experimental.pallas import tpu as pltpu


def _add_pe_kernel(x_ref, pe_ref, o_ref):
    # x_ref : (Bt, L*D) tile of the flattened input
    # pe_ref: (1,  L*D) positional-encoding slab (constant block -> VMEM resident)
    # o_ref : (Bt, L*D)
    o_ref[...] = (x_ref[...] + pe_ref[...]).astype(o_ref.dtype)


def make_pe_table(d_model: int, max_len: int = 601, dtype=jnp.float32):
    """Build the (max_len, d_model) sin/cos table exactly like the PyTorch buffer."""
    position = jnp.arange(max_len, dtype=jnp.float32)[:, None]           # (max_len, 1)
    div_term = jnp.exp(
        jnp.arange(0, d_model, 2, dtype=jnp.float32)
        * (-math.log(10000.0) / d_model)
    )                                                                     # (d_model/2,)
    angles = position * div_term                                          # (max_len, d_model/2)
    pe = jnp.zeros((max_len, d_model), dtype=jnp.float32)
    pe = pe.at[:, 0::2].set(jnp.sin(angles))
    pe = pe.at[:, 1::2].set(jnp.cos(angles))
    return pe.astype(dtype)


def _ceil_div(a: int, b: int) -> int:
    return -(-a // b)


@lru_cache(maxsize=1)
def _num_tensorcores_per_chip() -> int:
    """1 on v2/v3/v5e/v6e (single TC behind each device), 2 on v4/v5p/v7x."""
    try:
        kind = jax.devices()[0].device_kind.lower()
    except Exception:
        return 2  # conservative: assume dual-TC (extra split is only ~us of overhead)
    if ("lite" in kind) or ("v5e" in kind) or ("v6e" in kind) or ("v2" in kind) or ("v3" in kind):
        return 1
    return 2


def _pick_batch_tile(B: int, per_row_bytes: int, num_cores: int,
                     target_bytes: int) -> int:
    """Rows per block.

    Picks the largest sublane-aligned (multiple-of-8, or == B) tile whose
    combined x+out footprint is ~target_bytes.  Single-TC chips take one
    maximal block when it fits (the grid is serial there); dual-TC chips keep
    >= 2 blocks and prefer an even grid count so both cores get equal work.
    """
    if B <= 8:
        return B                                          # block == full sublane dim
    per_row_bytes = max(per_row_bytes, 1)
    bt = max(8, min(B, target_bytes // per_row_bytes))

    if num_cores <= 1:
        if bt >= B:
            return B                                      # one block, zero step overhead
        return max(8, (bt // 8) * 8)

    # Dual-TC (v7x): at least num_cores blocks so the "parallel" axis shards.
    bt = min(bt, max(8, B // num_cores))
    bt = max(8, (bt // 8) * 8)
    grid = _ceil_div(B, bt)
    if grid > 1 and grid % 2 == 1:
        # Prefer shrinking the tile (never grows VMEM); else grow modestly (<= 2x).
        for cand in range(bt - 8, 7, -8):
            if _ceil_div(B, cand) % 2 == 0:
                return cand
        for cand in range(bt + 8, 2 * bt + 1, 8):
            g = _ceil_div(B, cand)
            if g >= 2 and g % 2 == 0:
                return cand
    return bt


def _add_pe_pallas(x2: jax.Array, pe_flat: jax.Array, out_dtype,
                   target_block_bytes: int) -> jax.Array:
    """x2: (B, L*D) flattened input; pe_flat: (1, L*D) in out_dtype."""
    B, row = x2.shape
    in_itemsize = jnp.dtype(x2.dtype).itemsize
    out_itemsize = jnp.dtype(out_dtype).itemsize
    pe_itemsize = jnp.dtype(pe_flat.dtype).itemsize

    num_cores = _num_tensorcores_per_chip()
    target = min(int(target_block_bytes), 8 << 20)        # keep v7x-safe footprint
    per_row_bytes = row * (in_itemsize + out_itemsize)
    bt = _pick_batch_tile(B, per_row_bytes, num_cores, target)
    grid = (pl.cdiv(B, bt),)

    # Explicit scoped-VMEM limit: double-buffered x/out tiles + pe + headroom.
    pe_bytes = row * pe_itemsize
    needed = 2 * bt * per_row_bytes + 2 * pe_bytes + (2 << 20)
    vmem_limit = int(min(max(needed, 16 << 20), 48 << 20))

    out2 = pl.pallas_call(
        _add_pe_kernel,
        out_shape=jax.ShapeDtypeStruct((B, row), out_dtype),
        grid_spec=pltpu.PrefetchScalarGridSpec(
            num_scalar_prefetch=0,
            grid=grid,
            in_specs=[
                pl.BlockSpec((bt, row), lambda i: (i, 0)),   # x tile, lane-dense
                pl.BlockSpec((1, row), lambda i: (0, 0)),    # pe: constant block -> resident
            ],
            out_specs=pl.BlockSpec((bt, row), lambda i: (i, 0)),
        ),
        compiler_params=pltpu.CompilerParams(
            dimension_semantics=("parallel",),
            vmem_limit_bytes=vmem_limit,
        ),
        cost_estimate=pl.CostEstimate(
            flops=B * row,
            transcendentals=0,
            bytes_accessed=(B * row * in_itemsize       # read x
                            + pe_bytes                   # read pe (once)
                            + B * row * out_itemsize),   # write out
        ),
    )(x2, pe_flat)
    return out2


class CosSinPositionalEncoding:
    """JAX/Pallas port of the PyTorch module (dropout supported only at p=0.0)."""

    def __init__(self, d_model: int, dropout: float = 0.0, max_len: int = 601,
                 dtype=jnp.float32):
        if dropout != 0.0:
            # TODO(synk): dropout p>0 (training mode) would need pltpu.prng_*.
            raise NotImplementedError("only dropout p=0.0 is supported")
        self.d_model = d_model
        self.max_len = max_len
        self.pe = make_pe_table(d_model, max_len, dtype)   # (max_len, d_model) buffer
        self._pe_flat_cache = {}                           # (L, dtype) -> (1, L*D) slab

    def _pe_flat(self, L: int, dtype) -> jax.Array:
        key = (L, jnp.dtype(dtype).name)
        slab = self._pe_flat_cache.get(key)
        if slab is None:
            slab = self.pe[:L, :].reshape(1, L * self.d_model).astype(dtype)
            self._pe_flat_cache[key] = slab
        return slab

    def __call__(self, x: jax.Array, *, keep_input_dtype: bool = False,
                 force_pallas: bool = False,
                 target_block_bytes: int = 8 << 20,
                 min_pallas_bytes: int = 256 << 10) -> jax.Array:
        B, L, D = x.shape
        assert D == self.d_model, f"d_model mismatch: {D} vs {self.d_model}"
        assert L <= self.max_len, f"sequence length {L} exceeds pe max_len {self.max_len}"

        # torch promotion (f32 buffer) by default; opt-in bf16-in/bf16-out.
        out_dtype = x.dtype if keep_input_dtype else jnp.promote_types(x.dtype, self.pe.dtype)
        row = L * D
        pe_flat = self._pe_flat(L, out_dtype)              # memoized slice+reshape+cast

        total_bytes = B * row * jnp.dtype(x.dtype).itemsize
        if not force_pallas and total_bytes < min_pallas_bytes:
            # Tiny inputs: the custom-call boundary dominates; let XLA fuse a plain add.
            return (x.astype(out_dtype) + pe_flat.reshape(1, L, D)).astype(out_dtype)

        x2 = x.reshape(B, row)                             # free, contiguous reshape
        out2 = _add_pe_pallas(x2, pe_flat, out_dtype, target_block_bytes)
        return out2.reshape(B, L, D)


if __name__ == "__main__":
    # Small shapes consistent with the module: batch=2, seq=8, d_model=32.
    B, L, D = 2, 8, 32
    MAX_LEN = 601

    module = CosSinPositionalEncoding(d_model=D, max_len=MAX_LEN)

    key = jax.random.PRNGKey(0)
    k0, k1 = jax.random.split(key)

    # 1) Primary check at the module's small shape (single lane-dense block).
    x = jax.random.normal(k0, (B, L, D), dtype=jnp.float32)
    out = jax.block_until_ready(module(x, force_pallas=True))
    ref = x + module.pe[None, :L, :]
    assert out.shape == (B, L, D)
    assert out.dtype == ref.dtype
    assert jnp.allclose(out, ref, atol=1e-6), "mismatch vs reference"

    # 2) Multi-tile path: small block target forces grid > 1 (8-row sublane tiles).
    B2 = 64
    x_big = jax.random.normal(k1, (B2, L, D), dtype=jnp.float32)
    out_big = jax.block_until_ready(
        module(x_big, force_pallas=True, target_block_bytes=8 << 10))
    ref_big = x_big + module.pe[None, :L, :]
    assert jnp.allclose(out_big, ref_big, atol=1e-6), "mismatch vs reference (tiled)"

    # 3) Opt-in bf16-in/bf16-out path (reduced HBM write traffic).
    x_bf16 = x.astype(jnp.bfloat16)
    out_bf16 = jax.block_until_ready(
        module(x_bf16, force_pallas=True, keep_input_dtype=True))
    ref_bf16 = (x_bf16.astype(jnp.float32) + module.pe[None, :L, :]).astype(jnp.bfloat16)
    assert out_bf16.dtype == jnp.bfloat16
    assert jnp.allclose(out_bf16.astype(jnp.float32),
                        ref_bf16.astype(jnp.float32), atol=5e-2), "mismatch (bf16 path)"

    print("KERNEL_OK")
</pallas_src>

<mosaic_0001>
module attributes {stable_mosaic.version = 11 : i64} {
  func.func @_add_pe_kernel(%arg0: i32, %arg1: memref<2x256xf32, #tpu.memory_space<vmem>>, %arg2: memref<1x256xf32, #tpu.memory_space<vmem>>, %arg3: memref<2x256xf32, #tpu.memory_space<vmem>>) attributes {dimension_semantics = [#tpu.dimension_semantics<parallel>], iteration_bounds = array<i64: 1>, scalar_prefetch = 0 : i64, scratch_operands = 0 : i64, tpu.core_type = #tpu.core_type<tc>, window_params = [{transform_indices = @transform_0, window_bounds = array<i64: 2, 256>}, {pipeline_mode = #tpu.pipeline_mode<synchronous>, transform_indices = @transform_1, window_bounds = array<i64: 1, 256>}, {transform_indices = @transform_2, window_bounds = array<i64: 2, 256>}]} {
    %c0 = arith.constant 0 : index
    %c0_0 = arith.constant 0 : index
    %0 = vector.load %arg1[%c0, %c0_0] : memref<2x256xf32, #tpu.memory_space<vmem>>, vector<2x256xf32>
    %c0_1 = arith.constant 0 : index
    %c0_2 = arith.constant 0 : index
    %1 = vector.load %arg2[%c0_1, %c0_2] : memref<1x256xf32, #tpu.memory_space<vmem>>, vector<1x256xf32>
    %2 = vector.broadcast %1 : vector<1x256xf32> to vector<2x256xf32>
    %3 = arith.addf %0, %2 : vector<2x256xf32>
    %c0_3 = arith.constant 0 : index
    %c0_4 = arith.constant 0 : index
    %4 = vector.load %arg3[%c0_3, %c0_4] : memref<2x256xf32, #tpu.memory_space<vmem>>, vector<2x256xf32>
    tpu.vector_store %arg3[%c0_3, %c0_4], %3 {strides = array<i32>} : memref<2x256xf32, #tpu.memory_space<vmem>>, vector<2x256xf32>,
    return
  }
  func.func @transform_0(%arg0: i32) -> (i32, i32) {
    %c0_i32 = arith.constant 0 : i32
    %c0_i32_0 = arith.constant 0 : i32
    return %arg0, %c0_i32 : i32, i32
  }
  func.func @transform_1(%arg0: i32) -> (i32, i32) {
    %c0_i32 = arith.constant 0 : i32
    %c0_i32_0 = arith.constant 0 : i32
    %c0_i32_1 = arith.constant 0 : i32
    return %c0_i32, %c0_i32_0 : i32, i32
  }
  func.func @transform_2(%arg0: i32) -> (i32, i32) {
    %c0_i32 = arith.constant 0 : i32
    %c0_i32_0 = arith.constant 0 : i32
    return %arg0, %c0_i32 : i32, i32
  }
}

</mosaic_0001>

<bundles_post_ra>
// kernel: tpu_custom_call.1
= control target key start
LH: loop header
LB: loop body
LE: loop exit
PB: predicated region body
PF: predicated region fallthrough
CT: control target
= control target key end

     0   :  { %7 = vsyncpa [#allocation3], 0  ;;  %s172_s0 = inlined_call_operand.hbm [shape: f32[2,256], index: 0, kind: input, shape index: {}]   ;;  %s173_s1 = inlined_call_operand.hbm [shape: f32[1,256], index: 1, kind: input, shape index: {}]   ;;  %s174_s2 = inlined_call_operand.hbm [shape: f32[2,256], index: 2, kind: output, shape index: {}]  }
   0x1   :  { %8 = vsyncpa [#allocation6], 0 }
   0x2   :  { %9 = vsyncpa [#allocation4], 0  ;;  %s144_s9 = smov [#allocation2]   ;;  %s145_s11 = smov [#allocation5]  }
   0x3   :  { %s16_s10 = sshll.u32 %s144_s9, 4  ;;  %s26_s12 = sshll.u32 %s145_s11, 4  ;;  %s17_s10 = int_to_ptr.vmem [resolvable:$true] %s16_s10  ;;  %s27_s12 = int_to_ptr.vmem [resolvable:$true] %s26_s12 }
   0x4   :  { %s86_s13 = scalar_lea.vmem %s17_s10, 64  ;;  %p91_p1 = scmp.lt.s32.totalorder %s17_s10, %s17_s10 }
   0x5   :  { %p87_p0 = scmp.ne.s32.totalorder %s17_s10, %s86_s13  ;;  %p92_p2 = scmp.lt.s32.totalorder %s86_s13, %s86_s13 }
   0x7   :  { %p93_p3 = por %p92_p2, %p91_p1 }
   0x9   :  { %p94_p4 = pnand %p93_p3, %p87_p0 }
   0xb   :  { %97 = shalt.err (!%p94_p4)
}
   0xc   :  { %19 = dma.hbm_to_vmem [thread:$0]  %s172_s0, 64, %s17_s10, [#allocation3]  }
   0xd   :  { %s106_s16 = scalar_lea.vmem %s27_s12, 32  ;;  %p111_p6 = scmp.lt.s32.totalorder %s27_s12, %s27_s12 }
   0xe   :  { %p107_p5 = scmp.ne.s32.totalorder %s27_s12, %s106_s16  ;;  %p112_p7 = scmp.lt.s32.totalorder %s106_s16, %s106_s16 }
  0x10   :  { %p113_p8 = por %p112_p7, %p111_p6 }
  0x12   :  { %p114_p9 = pnand %p113_p8, %p107_p5 }
  0x14   :  { %117 = shalt.err (!%p114_p9)
}
  0x15   :  { %29 = dma.hbm_to_vmem [thread:$0]  %s173_s1, 32, %s27_s12, [#allocation6]  }
  0x16   :  { %138 = dma.done.wait [#allocation3], 64  }
  0x17   :  { %139 = vsyncadd [#allocation3], 4294967232 }
  0x18   :  { %140 = dma.done.wait [#allocation6], 32  }
  0x19   :  { %141 = vsyncadd [#allocation6], 4294967264  ;;  %v39_v0 = vlaneseq  ;;  %v146_v1 = vmov 1983009808   ;;  %v37_v7 = vld [vmem:[#allocation5] sm:$0x3] }
  0x1a   :  { %v49_v2 = vunpack.c.l.s4 %v146_v1  ;;  %v36_v12 = vld [vmem:[#allocation2] sm:$0xf]  ;;  %s147_s0 = smov [#allocation7]  }
  0x1b   :  { %v40_v3 = vshrl.u32 %v39_v0, 7  ;;  %s64_s19 = sshll.u32 %s147_s0, 4  ;;  %s65_s19 = int_to_ptr.vmem [resolvable:$true] %s64_s19 }
  0x1c   :  { %v50_v6 = vunpack.c.0.s8 %v49_v2  ;;  %s118_s1 = scalar_lea.vmem %s65_s19, 64  ;;  %p123_p11 = scmp.lt.s32.totalorder %s65_s19, %s65_s19 }
  0x1d   :  { %v41_v4 = vsub.s32 0, %v40_v3  ;;  %v45_v5 = vsub.s32 1, %v40_v3  ;;  %p119_p10 = scmp.ne.s32.totalorder %s65_s19, %s118_s1  ;;  %p124_p12 = scmp.lt.s32.totalorder %s118_s1, %s118_s1 }
  0x1e   :  { %v53_v10 = vsub.s32 %v50_v6, %v40_v3 }
  0x1f   :  { %v42_v8 = vrot.slane %v37_v7, %v41_v4  ;;  %v46_v9 = vrot.slane %v37_v7, %v45_v5  ;;  %p125_p13 = por %p124_p12, %p123_p11 }
  0x21   :  { %v47_v11 = vcombine.low %v42_v8, %v46_v9  ;;  %p126_p0 = pnand %p125_p13, %p119_p10 }
  0x23   :  { %v54_v13 = vrot.slane %v47_v11, %v53_v10 }
  0x25   :  { %v56_v14 = vadd.f32 %v54_v13, %v36_v12 }
  0x27   :  { %57 = vst [vmem:[#allocation7] sm:$0xf] %v56_v14 }
  0x28   :  { %129 = shalt.err (!%p126_p0)
}
  0x29   :  { %67 = dma.vmem_to_hbm [thread:$0]  %s65_s19, 64, %s174_s2, [#allocation4]  }
  0x2a   :  { %142 = dma.done.wait [#allocation4], 64  }
  0x2b   :  { %143 = vsyncadd [#allocation4], 4294967232 }
  0x2c   :  { %71 = vsyncpa [#allocation3], 1 }
  0x2d   :  { %72 = vsyncpa [#allocation6], 1 }
  0x2e   :  { %73 = vsyncpa [#allocation4], 1 }

</bundles_post_ra>
